<compile_context>
chip_gen: v6e
topology: v6e:2x2x1
jax: 0.10.0
libtpu: 0.0.40
codegen_flags: <defaults>
</compile_context>

<pallas_src>
import jax
import jax.numpy as jnp
from jax.experimental import pallas as pl
from jax.experimental.pallas import tpu as pltpu


def _mlp_kernel(x_ref, w0_ref, w123_ref, b_ref, w4_ref, b4_ref, o_ref):
    """One batch tile of the 5-layer Tanh MLP with P samples lane-packed per row.

    x_ref   : (TBR, P*D_in)   f32  packed input rows (P samples per row)
    w0_ref  : (P*D_in, P*H)   f32  block-diagonal layer-0 weight
    w123_ref: (3, P*H, P*H)   f32  block-diagonal layers 1..3 weights
    b_ref   : (4, P*H)        f32  hidden-layer biases, each tiled P times
    w4_ref  : (P*H, P)        f32  block-diagonal head weight
    b4_ref  : (1, 1)          f32  head bias
    o_ref   : (TBR, P)        f32  packed output (row-major == (TBR*P, 1))
    """
    bias = b_ref[...]                                         # (4, P*H), tiny
    h = jnp.tanh(jnp.dot(x_ref[...], w0_ref[...],
                         preferred_element_type=jnp.float32) + bias[0:1, :])
    for k in range(3):                                        # static unroll
        h = jnp.tanh(jnp.dot(h, w123_ref[k],
                             preferred_element_type=jnp.float32)
                     + bias[k + 1:k + 2, :])
    # Head: block-diagonal (P*H, P) -> (TBR, P); wrapper reshape to (B,1) is free.
    o_ref[...] = jnp.dot(h, w4_ref[...],
                         preferred_element_type=jnp.float32) + b4_ref[...]


def _block_diag(w, p):
    """(n, m) -> (p*n, p*m) block-diagonal matrix with p copies of w."""
    return jnp.kron(jnp.eye(p, dtype=w.dtype), w)


def value_network_forward(x, params, *, max_rows_per_step=256):
    """x: (B, D_in) f32. params: list of 5 (W, b) with W:(in,out), b:(1,out)."""
    B, d_in = x.shape
    (w0, b0), (w1, b1), (w2, b2), (w3, b3), (w4, b4) = params
    h_dim = w0.shape[1]

    # Lane-packing factor: P samples share one 128-lane row (P=4 for D_in=H=32).
    p = max(1, min(128 // d_in, 128 // h_dim))
    pd, ph = p * d_in, p * h_dim

    # Row tile: big enough to amortize per-step overhead, but keep >= 2 grid
    # steps so the "parallel" batch axis can shard across both v7x TensorCores.
    rows = -(-B // p)
    tbr = max_rows_per_step
    while tbr > 8 and rows <= tbr:
        tbr //= 2
    tbr = max(tbr, 8)
    rows_pad = -(-rows // tbr) * tbr
    b_pad = rows_pad * p

    # Single f32 pad only when needed; no dtype cast in the wrapper.
    x_p = x if b_pad == B else jnp.pad(x, ((0, b_pad - B), (0, 0)))
    x_packed = x_p.reshape(rows_pad, pd)          # free row-major view

    # Consolidated, block-diagonally packed parameters (5 inputs besides x).
    f32 = jnp.float32
    w0p = _block_diag(w0.astype(f32), p)                               # (pd, ph)
    w123p = jnp.stack([_block_diag(w.astype(f32), p)
                       for w in (w1, w2, w3)])                         # (3, ph, ph)
    biases = jnp.stack([jnp.tile(b.astype(f32).reshape(1, h_dim), (1, p))[0]
                        for b in (b0, b1, b2, b3)])                    # (4, ph)
    w4p = _block_diag(w4.astype(f32).reshape(h_dim, 1), p)             # (ph, p)
    b4p = b4.astype(f32).reshape(1, 1)                                 # (1, 1)

    grid = (rows_pad // tbr,)
    in_specs = [
        pl.BlockSpec((tbr, pd), lambda i: (i, 0)),      # x streams per step
        pl.BlockSpec((pd, ph), lambda i: (0, 0)),       # weights: VMEM-resident,
        pl.BlockSpec((3, ph, ph), lambda i: (0, 0, 0)), # constant index maps ->
        pl.BlockSpec((4, ph), lambda i: (0, 0)),        # no re-DMA across steps
        pl.BlockSpec((ph, p), lambda i: (0, 0)),
        pl.BlockSpec((1, 1), lambda i: (0, 0)),
    ]
    out_spec = pl.BlockSpec((tbr, p), lambda i: (i, 0))

    flops = 2 * rows_pad * (pd * ph + 3 * ph * ph + ph * p)
    transcendentals = 4 * rows_pad * ph
    bytes_accessed = 4 * (x_packed.size + w0p.size + w123p.size
                          + biases.size + w4p.size + 1 + rows_pad * p)

    out = pl.pallas_call(
        _mlp_kernel,
        out_shape=jax.ShapeDtypeStruct((rows_pad, p), jnp.float32),
        grid_spec=pltpu.PrefetchScalarGridSpec(
            num_scalar_prefetch=0,
            grid=grid,
            in_specs=in_specs,
            out_specs=out_spec,
        ),
        compiler_params=pltpu.CompilerParams(
            dimension_semantics=("parallel",)),
        cost_estimate=pl.CostEstimate(
            flops=flops,
            transcendentals=transcendentals,
            bytes_accessed=bytes_accessed),
    )(x_packed, w0p, w123p, biases, w4p, b4p)

    # (rows_pad, P) row-major == (B_pad, 1); drop pad rows.
    return out.reshape(b_pad, 1)[:B]


def init_params(key, input_dim, gru_dim, hidden_dim):
    """Deterministic synthetic parameters matching the PyTorch module's shapes."""
    d_in = input_dim + gru_dim
    h = hidden_dim + gru_dim
    dims = [(d_in, h), (h, h), (h, h), (h, h), (h, 1)]
    params = []
    for (fan_in, fan_out) in dims:
        key, kw, kb = jax.random.split(key, 3)
        bound = 1.0 / jnp.sqrt(fan_in)  # PyTorch Linear default init range
        w = jax.random.uniform(kw, (fan_in, fan_out), jnp.float32, -bound, bound)
        b = jax.random.uniform(kb, (1, fan_out), jnp.float32, -bound, bound)
        params.append((w, b))
    return params


def reference_forward(x, params):
    h = x
    for (w, b) in params[:-1]:
        h = jnp.tanh(h @ w + b)
    w, b = params[-1]
    return h @ w + b


if __name__ == "__main__":
    # Small shapes consistent with the module:
    #   input_dim=16, gru_dim=16 -> D_in=32 ; hidden_dim=16 -> H=32 (P=4 packing).
    # batch=200 exercises padding (200 -> 256) and a 2-step "parallel" grid.
    input_dim, gru_dim, hidden_dim = 16, 16, 16
    batch = 200

    key = jax.random.PRNGKey(0)
    key, kx = jax.random.split(key)
    x = jax.random.normal(kx, (batch, input_dim + gru_dim), jnp.float32)

    params = init_params(key, input_dim, gru_dim, hidden_dim)

    out = value_network_forward(x, params)
    out = jax.block_until_ready(out)

    ref = reference_forward(x, params)
    assert out.shape == (batch, 1)
    # Loose tolerance only to cover MXU internal matmul precision differences.
    assert jnp.allclose(out, ref, atol=3e-2, rtol=3e-2), "mismatch vs reference"

    # TODO(synk): loss_function / optimizer / training step are not part of the
    # forward pass and are not translated.
    print("KERNEL_OK")
</pallas_src>

<mosaic_0001>
module attributes {stable_mosaic.version = 11 : i64} {
  func.func @_mlp_kernel(%arg0: i32, %arg1: memref<32x128xf32, #tpu.memory_space<vmem>>, %arg2: memref<128x128xf32, #tpu.memory_space<vmem>>, %arg3: memref<3x128x128xf32, #tpu.memory_space<vmem>>, %arg4: memref<4x128xf32, #tpu.memory_space<vmem>>, %arg5: memref<128x4xf32, #tpu.memory_space<vmem>>, %arg6: memref<1x1xf32, #tpu.memory_space<vmem>>, %arg7: memref<32x4xf32, #tpu.memory_space<vmem>>) attributes {dimension_semantics = [#tpu.dimension_semantics<parallel>], iteration_bounds = array<i64: 2>, scalar_prefetch = 0 : i64, scratch_operands = 0 : i64, tpu.core_type = #tpu.core_type<tc>, window_params = [{transform_indices = @transform_0, window_bounds = array<i64: 32, 128>}, {pipeline_mode = #tpu.pipeline_mode<synchronous>, transform_indices = @transform_1, window_bounds = array<i64: 128, 128>}, {pipeline_mode = #tpu.pipeline_mode<synchronous>, transform_indices = @transform_2, window_bounds = array<i64: 3, 128, 128>}, {pipeline_mode = #tpu.pipeline_mode<synchronous>, transform_indices = @transform_3, window_bounds = array<i64: 4, 128>}, {pipeline_mode = #tpu.pipeline_mode<synchronous>, transform_indices = @transform_4, window_bounds = array<i64: 128, 4>}, {pipeline_mode = #tpu.pipeline_mode<synchronous>, transform_indices = @transform_5, window_bounds = array<i64: 1, 1>}, {transform_indices = @transform_6, window_bounds = array<i64: 32, 4>}]} {
    %c0 = arith.constant 0 : index
    %c0_0 = arith.constant 0 : index
    %0 = vector.load %arg4[%c0, %c0_0] : memref<4x128xf32, #tpu.memory_space<vmem>>, vector<4x128xf32>
    %c0_1 = arith.constant 0 : index
    %c0_2 = arith.constant 0 : index
    %1 = vector.load %arg1[%c0_1, %c0_2] : memref<32x128xf32, #tpu.memory_space<vmem>>, vector<32x128xf32>
    %c0_3 = arith.constant 0 : index
    %c0_4 = arith.constant 0 : index
    %2 = vector.load %arg2[%c0_3, %c0_4] : memref<128x128xf32, #tpu.memory_space<vmem>>, vector<128x128xf32>
    %cst = arith.constant dense<0.000000e+00> : vector<32x128xf32>
    %3 = tpu.matmul %1, %2, %cst {dimension_numbers = #tpu.dot_dimension_numbers<[1], [0], [0], [1], [0, 0, 1, 1], [], []>} : vector<32x128xf32>, vector<128x128xf32>, vector<32x128xf32> -> vector<32x128xf32>
    %4 = vector.extract_strided_slice %0 {offsets = [0, 0], sizes = [1, 128], strides = [1, 1]} : vector<4x128xf32> to vector<1x128xf32>
    %5 = vector.broadcast %4 : vector<1x128xf32> to vector<32x128xf32>
    %6 = arith.addf %3, %5 : vector<32x128xf32>
    %7 = math.tanh %6 : vector<32x128xf32>
    %c0_5 = arith.constant 0 : index
    %c0_6 = arith.constant 0 : index
    %c0_7 = arith.constant 0 : index
    %8 = vector.load %arg3[%c0_5, %c0_6, %c0_7] : memref<3x128x128xf32, #tpu.memory_space<vmem>>, vector<1x128x128xf32>
    %9 = vector.shape_cast %8 : vector<1x128x128xf32> to vector<128x128xf32>
    %cst_8 = arith.constant dense<0.000000e+00> : vector<32x128xf32>
    %10 = tpu.matmul %7, %9, %cst_8 {dimension_numbers = #tpu.dot_dimension_numbers<[1], [0], [0], [1], [0, 0, 1, 1], [], []>} : vector<32x128xf32>, vector<128x128xf32>, vector<32x128xf32> -> vector<32x128xf32>
    %11 = vector.extract_strided_slice %0 {offsets = [1, 0], sizes = [1, 128], strides = [1, 1]} : vector<4x128xf32> to vector<1x128xf32>
    %12 = vector.broadcast %11 : vector<1x128xf32> to vector<32x128xf32>
    %13 = arith.addf %10, %12 : vector<32x128xf32>
    %14 = math.tanh %13 : vector<32x128xf32>
    %c1 = arith.constant 1 : index
    %c0_9 = arith.constant 0 : index
    %c0_10 = arith.constant 0 : index
    %15 = vector.load %arg3[%c1, %c0_9, %c0_10] : memref<3x128x128xf32, #tpu.memory_space<vmem>>, vector<1x128x128xf32>
    %16 = vector.shape_cast %15 : vector<1x128x128xf32> to vector<128x128xf32>
    %cst_11 = arith.constant dense<0.000000e+00> : vector<32x128xf32>
    %17 = tpu.matmul %14, %16, %cst_11 {dimension_numbers = #tpu.dot_dimension_numbers<[1], [0], [0], [1], [0, 0, 1, 1], [], []>} : vector<32x128xf32>, vector<128x128xf32>, vector<32x128xf32> -> vector<32x128xf32>
    %18 = vector.extract_strided_slice %0 {offsets = [2, 0], sizes = [1, 128], strides = [1, 1]} : vector<4x128xf32> to vector<1x128xf32>
    %19 = vector.broadcast %18 : vector<1x128xf32> to vector<32x128xf32>
    %20 = arith.addf %17, %19 : vector<32x128xf32>
    %21 = math.tanh %20 : vector<32x128xf32>
    %c2 = arith.constant 2 : index
    %c0_12 = arith.constant 0 : index
    %c0_13 = arith.constant 0 : index
    %22 = vector.load %arg3[%c2, %c0_12, %c0_13] : memref<3x128x128xf32, #tpu.memory_space<vmem>>, vector<1x128x128xf32>
    %23 = vector.shape_cast %22 : vector<1x128x128xf32> to vector<128x128xf32>
    %cst_14 = arith.constant dense<0.000000e+00> : vector<32x128xf32>
    %24 = tpu.matmul %21, %23, %cst_14 {dimension_numbers = #tpu.dot_dimension_numbers<[1], [0], [0], [1], [0, 0, 1, 1], [], []>} : vector<32x128xf32>, vector<128x128xf32>, vector<32x128xf32> -> vector<32x128xf32>
    %25 = vector.extract_strided_slice %0 {offsets = [3, 0], sizes = [1, 128], strides = [1, 1]} : vector<4x128xf32> to vector<1x128xf32>
    %26 = vector.broadcast %25 : vector<1x128xf32> to vector<32x128xf32>
    %27 = arith.addf %24, %26 : vector<32x128xf32>
    %28 = math.tanh %27 : vector<32x128xf32>
    %c0_15 = arith.constant 0 : index
    %c0_16 = arith.constant 0 : index
    %29 = vector.load %arg5[%c0_15, %c0_16] : memref<128x4xf32, #tpu.memory_space<vmem>>, vector<128x4xf32>
    %cst_17 = arith.constant dense<0.000000e+00> : vector<32x4xf32>
    %30 = tpu.matmul %28, %29, %cst_17 {dimension_numbers = #tpu.dot_dimension_numbers<[1], [0], [0], [1], [0, 0, 1, 1], [], []>} : vector<32x128xf32>, vector<128x4xf32>, vector<32x4xf32> -> vector<32x4xf32>
    %c0_18 = arith.constant 0 : index
    %c0_19 = arith.constant 0 : index
    %31 = vector.load %arg6[%c0_18, %c0_19] : memref<1x1xf32, #tpu.memory_space<vmem>>, vector<1x1xf32>
    %32 = vector.broadcast %31 : vector<1x1xf32> to vector<32x4xf32>
    %33 = arith.addf %30, %32 : vector<32x4xf32>
    %c0_20 = arith.constant 0 : index
    %c0_21 = arith.constant 0 : index
    %34 = vector.load %arg7[%c0_20, %c0_21] : memref<32x4xf32, #tpu.memory_space<vmem>>, vector<32x4xf32>
    tpu.vector_store %arg7[%c0_20, %c0_21], %33 {strides = array<i32>} : memref<32x4xf32, #tpu.memory_space<vmem>>, vector<32x4xf32>,
    return
  }
  func.func @transform_0(%arg0: i32) -> (i32, i32) {
    %c0_i32 = arith.constant 0 : i32
    %c0_i32_0 = arith.constant 0 : i32
    return %arg0, %c0_i32 : i32, i32
  }
  func.func @transform_1(%arg0: i32) -> (i32, i32) {
    %c0_i32 = arith.constant 0 : i32
    %c0_i32_0 = arith.constant 0 : i32
    %c0_i32_1 = arith.constant 0 : i32
    return %c0_i32, %c0_i32_0 : i32, i32
  }
  func.func @transform_2(%arg0: i32) -> (i32, i32, i32) {
    %c0_i32 = arith.constant 0 : i32
    %c0_i32_0 = arith.constant 0 : i32
    %c0_i32_1 = arith.constant 0 : i32
    %c0_i32_2 = arith.constant 0 : i32
    return %c0_i32, %c0_i32_0, %c0_i32_1 : i32, i32, i32
  }
  func.func @transform_3(%arg0: i32) -> (i32, i32) {
    %c0_i32 = arith.constant 0 : i32
    %c0_i32_0 = arith.constant 0 : i32
    %c0_i32_1 = arith.constant 0 : i32
    return %c0_i32, %c0_i32_0 : i32, i32
  }
  func.func @transform_4(%arg0: i32) -> (i32, i32) {
    %c0_i32 = arith.constant 0 : i32
    %c0_i32_0 = arith.constant 0 : i32
    %c0_i32_1 = arith.constant 0 : i32
    return %c0_i32, %c0_i32_0 : i32, i32
  }
  func.func @transform_5(%arg0: i32) -> (i32, i32) {
    %c0_i32 = arith.constant 0 : i32
    %c0_i32_0 = arith.constant 0 : i32
    %c0_i32_1 = arith.constant 0 : i32
    return %c0_i32, %c0_i32_0 : i32, i32
  }
  func.func @transform_6(%arg0: i32) -> (i32, i32) {
    %c0_i32 = arith.constant 0 : i32
    %c0_i32_0 = arith.constant 0 : i32
    return %arg0, %c0_i32 : i32, i32
  }
}

</mosaic_0001>

<bundles_post_ra>
// kernel: tpu_custom_call.1
= control target key start
LH: loop header
LB: loop body
LE: loop exit
PB: predicated region body
PF: predicated region fallthrough
CT: control target
= control target key end

     0   :  { %s1741_s0 = inlined_call_operand.hbm [shape: f32[64,128], index: 0, kind: input, shape index: {}]   ;;  %s1742_s1 = inlined_call_operand.vmem [shape: f32[128,128], index: 1, kind: input, shape index: {}]   ;;  %s1743_s2 = inlined_call_operand.hbm [shape: f32[3,128,128], index: 2, kind: input, shape index: {}]   ;;  %s1744_s3 = inlined_call_operand.vmem [shape: f32[4,128], index: 3, kind: input, shape index: {}]   ;;  %s1745_s4 = inlined_call_operand.vmem [shape: f32[128,4], index: 4, kind: input, shape index: {}]   ;;  %s1746_s5 = inlined_call_operand.<no memory space> [shape: f32[1,1], index: 5, kind: input, shape index: {}]   ;;  %s1747_s6 = inlined_call_operand.vmem [shape: f32[64,4], index: 6, kind: output, shape index: {}]  }
   0x1   :  { %v11_v0 = vstv %s1746_s5 }
   0x2   :  { %12 = vst [vmem:[#allocation2] sm:$0x1] %v11_v0 }
   0x3   :  { %13 = vsyncpa [#allocation4], 0 }
   0x4   :  { %15 = vsyncpa [#allocation4 + $0x1], 0 }
   0x5   :  { %16 = vsyncpa [#allocation6], 0  ;;  %s1489_s23 = smov 0   ;;  %s1491_s24 = smov 0  }
   0x6   :  { %s1493_s25 = smov 0   ;;  %s1495_s26 = smov 0  }
   0x7 LB: > { %s927_s5 = sadd.s32 4294967295, %s1444_s26   ;;  %p42_p0 = scmp.ne.s32.totalorder %s1436_s24, %s1432_s23  ;;  %s1444_s26 = sphi %s1495_s26, %s1763_s26   ;;  %s1440_s25 = sphi %s1493_s25, %s1762_s25   ;;  %s1436_s24 = sphi %s1491_s24, %s1761_s24   ;;  %s1432_s23 = sphi %s1489_s23, %s1760_s23  }
   0x8   : > { %p1511_p1 = scmp.eq.s32.totalorder %s927_s5, 0  ;;  %p929_p2 = scmp.ge.s32.totalorder %s1444_s26, 1 }
   0x9   : > { %p184_p3 = scmp.lt.s32.totalorder %s1444_s26, 3  ;;  %s1446_s30 = smov [#allocation5]  }
   0xa   : > { %s1752_s27 = scalar_select %p1511_p1, 1, 0 }
   0xb   : > { %p1519_p4 = por %p1511_p1, %p42_p0  ;;  %p1523_p5 = pnand %p929_p2, %p184_p3 }
   0xc   : > { %s199_s7 = sshll.u32 %s1446_s30, 4  ;;  %s1536_s9 = sadd.s32 1, %s1444_s26   ;;  %s200_s7 = int_to_ptr.vmem [resolvable:$true] %s199_s7 }
   0xd   : > { %s1753_s28 = scalar_select %p1519_p4, 1, 0 }
   0xe   : > { %s1754_s29 = scalar_select %p1523_p5, 1, 0 }
   0xf   : > { %p1272_p6 = pneg %p1523_p5  ;;  %s29_s10 = sadd.s32 1, %s1440_s25 }
  0x10   : > { %s26_s11 = ssub.s32 %s1444_s26, %s1536_s9  ;;  %s1363_s12 = scalar_lea.vmem %s200_s7, 6144 }
  0x11   : > { %p1531_p7 = pnand %p1272_p6, %p1511_p1  ;;  %p1364_p9 = scmp.ne.s32.totalorder %s200_s7, %s1363_s12 }
  0x12   : > { %p1371_p12 = scmp.lt.s32.totalorder %s200_s7, %s200_s7  ;;  %p1372_p13 = scmp.lt.s32.totalorder %s1363_s12, %s1363_s12 }
  0x13   : > { %p1354_p8 = pneg %p1531_p7 }
  0x14   : > { %p1373_p0 = por %p1372_p13, %p1371_p12 }
  0x15   : > { %p1366_p10 = pnand %p1364_p9, %p1354_p8 }
  0x17   : > { %p1367_p11 = pneg %p1366_p10 }
  0x19   : > { %p1374_p2 = pnand %p1373_p0, %p1367_p11 }
  0x1b   : > { %1377 = shalt.err (!%p1374_p2)
}
  0x1c   : > { %s1447_s13 = smov 128   ;;  %s1448_s14 = smov 8  }
  0x1d   : > { %1275 = dma.hbm_to_vmem [thread:$0]  (!%p1531_p7), %s1743_s2, 6144, %s200_s7, [#allocation6], %s1447_s13, %s1447_s13, %s1448_s14  }
  0x1e   : > { %p27_p3 = scmp.eq.s32.totalorder %s26_s11, 0  ;;  %p36_p6 = scmp.ne.s32.totalorder %s1440_s25, %s1436_s24 }
  0x1f   : > { %p37_p8 = scmp.eq.s32.totalorder %s1444_s26, 0  ;;  %p1281_p9 = scmp.lt.s32.totalorder %s1444_s26, 2 }
  0x20   : > { %s1556_s17 = scalar_select %p27_p3, %s1440_s25, %s29_s10  }
  0x21   : > { %p38_p10 = por %p37_p8, %p36_p6  ;;  %s222_s18 = sand.u32 1, %s1440_s25  }
  0x22   : > { %s932_s19 = sshll.u32 %s222_s18, 5  ;;  %s943_s20 = sshll.u32 %s1444_s26, 9 }
  0x23   : > { %s1563_s23 = scalar_lea.hbm %s1741_s0, %s943_s20  ;;  %s226_s30 = scalar_lea.vmem [#allocation3], %s932_s19 }
  0x24   : > { %s233_s7 = sshll.u32 %s226_s30, 4  ;;  %p1567_p7 = pnand %p1281_p9, %p38_p10  ;;  %s1565_s7 = int_to_ptr.vmem [resolvable:$true] %s233_s7 }
  0x25   : > { %s1571_s10 = scalar_lea.sflag [#allocation4], %s222_s18  ;;  %s1378_s11 = scalar_lea.hbm %s1563_s23, 512 }
  0x26   : > { %p1379_p11 = scmp.ne.s32.totalorder %s1563_s23, %s1378_s11  ;;  %p1380_p12 = pneg %p1567_p7 }
  0x27   : > { %s1383_s16 = scalar_lea.hbm %s1741_s0, 1024  ;;  %p1384_p2 = scmp.lt.s32.totalorder %s1563_s23, %s1741_s0 }
  0x28   : > { %p1381_p13 = pnand %p1380_p12, %p1379_p11  ;;  %p1385_p3 = scmp.lt.s32.totalorder %s1383_s16, %s1378_s11 }
  0x2a   : > { %p1382_p0 = pneg %p1381_p13  ;;  %p1386_p6 = por %p1385_p3, %p1384_p2 }
  0x2c   : > { %p1387_p8 = pnand %p1386_p6, %p1382_p0 }
  0x2e   : > { %1390 = shalt.err (!%p1387_p8)
}
  0x2f   : > { %s1391_s18 = scalar_lea.vmem %s1565_s7, 512  ;;  %s1449_s21 = smov [#allocation3]  }
  0x30   : > { %p1392_p9 = scmp.ne.s32.totalorder %s1565_s7, %s1391_s18  ;;  %s1396_s22 = sshll.u32 %s1449_s21, 4  ;;  %s1397_s22 = int_to_ptr.vmem [resolvable:$false] %s1396_s22 }
  0x31   : > { %s1398_s30 = scalar_lea.vmem %s1397_s22, 1024  ;;  %p1399_p13 = scmp.lt.s32.totalorder %s1565_s7, %s1397_s22 }
  0x32   : > { %p1394_p10 = pnand %p1392_p9, %p1380_p12  ;;  %p1400_p1 = scmp.lt.s32.totalorder %s1398_s30, %s1391_s18 }
  0x34   : > { %p1395_p11 = pneg %p1394_p10  ;;  %p1401_p4 = por %p1400_p1, %p1399_p13 }
  0x36   : > { %p1402_p5 = pnand %p1401_p4, %p1395_p11 }
  0x38   : > { %1405 = shalt.err (!%p1402_p5)
}
  0x39   : > { %1279 = dma.hbm_to_vmem [thread:$0]  (!%p1567_p7), %s1563_s23, 512, %s1565_s7, %s1571_s10, %s1447_s13, %s1447_s13, %s1448_s14  }
  0x3a   : > { %p1757_p12 = scmp.ne.s32.totalorder %s1754_s29, 0 }
  0x3b   : > { %s247_s11 = sand.u32 (!%p1757_p12), 1, %s1436_s24   ;;  %p1758_p1 = scmp.ne.s32.totalorder (!%p1757_p12), %s1753_s28, 0 }
  0x3c   : > { %245 = sbr.rel (%p1757_p12) target bundleno = 1152 (0x480), region = 44  ;;  %s936_s12 = sshll.u32 (!%p1757_p12), %s247_s11, 5 }
  0x3d   : > { %s248_s15 = scalar_lea.sflag (!%p1757_p12), [#allocation4], %s247_s11  ;;  %s1598_s16 = scalar_lea.vmem (!%p1757_p12), [#allocation3], %s936_s12 }
  0x41   : > { %1423 = dma.done.wait (%p1758_p1), %s248_s15, 512  }
  0x42   : > { %1425 = vsyncadd (%p1758_p1), %s248_s15, 4294966784  ;;  %p1759_p4 = scmp.ne.s32.totalorder %s1752_s27, 0 }
  0x44   : > { %1427 = dma.done.wait (%p1759_p4), [#allocation6], 6144  }
  0x45   : > { %1429 = vsyncadd (%p1759_p4), [#allocation6], 4294961152  ;;  %v311_v1 = vld [vmem:[%s1742_s1 + $0x78] sm:$0xff]  ;;  %v310_v2 = vld [vmem:[%s1742_s1 + $0x70] sm:$0xff]  ;;  %v312_v43 = vlaneseq  ;;  %s938_s20 = sshll.u32 %s927_s5, 2  ;;  %vm845_vm0 = vcmask 31744  }
  0x46   : > { %1044 = vmatprep.subr.mxu0 %v311_v1  ;;  %v309_v3 = vld [vmem:[%s1742_s1 + $0x68] sm:$0xff]  ;;  %v308_v4 = vld [vmem:[%s1742_s1 + $0x60] sm:$0xff]  ;;  %v307_v6 = vld [vmem:[%s1742_s1 + $0x58] sm:$0xff]  ;;  %p286_p5 = scmp.lt.s32.totalorder %s938_s20, 7 }
  0x47   : > { %1045 = vmatpush3.msra.mxu0 %v311_v1  ;;  %v292_v5 = vld [vmem:[%s1598_s16] sm:$0xff]  ;;  %v420_v7 = vld [vmem:[#allocation5 + $0x78] sm:$0xff]  ;;  %v419_v8 = vld [vmem:[#allocation5 + $0x70] sm:$0xff]  ;;  %v1660_v44 = vshrl.u32 %v312_v43, 7 }
  0x48   : > { %1046 = vmatprep.subr.mxu0 %v310_v2  ;;  %1076 = vmatprep.mubr.f32.mxu0 %v292_v5  ;;  %v306_v9 = vld [vmem:[%s1742_s1 + $0x50] sm:$0xff]  ;;  %v305_v11 = vld [vmem:[%s1742_s1 + $0x48] sm:$0xff]  ;;  %v304_v13 = vld [vmem:[%s1742_s1 + $0x40] sm:$0xff]  ;;  %s1765_s20 = smov (!%p286_p5, %s938_s20), 7 }
  0x49   : > { %1047 = vmatpush3.msra.mxu0 %v310_v2  ;;  %1082 = vmatprep.subr.mxu1 %v420_v7  ;;  %v418_v10 = vld [vmem:[#allocation5 + $0x68] sm:$0xff]  ;;  %v417_v12 = vld [vmem:[#allocation5 + $0x60] sm:$0xff]  ;;  %v416_v14 = vld [vmem:[#allocation5 + $0x58] sm:$0xff]  ;;  %v314_v45 = vsub.s32 0, %v1660_v44  ;;  %s939_s18 = sshll.u32 %s1765_s20, 3 }
  0x4a   : > { %1048 = vmatprep.subr.mxu0 %v309_v3  ;;  %1083 = vmatpush3.msra.mxu1 %v420_v7  ;;  %v303_v15 = vld [vmem:[%s1742_s1 + $0x38] sm:$0xff]  ;;  %v302_v17 = vld [vmem:[%s1742_s1 + $0x30] sm:$0xff]  ;;  %v301_v18 = vld [vmem:[%s1742_s1 + $0x28] sm:$0xff] }
  0x4b   : > { %1049 = vmatpush3.msra.mxu0 %v309_v3  ;;  %1084 = vmatprep.subr.mxu1 %v419_v8  ;;  %v415_v16 = vld [vmem:[#allocation5 + $0x50] sm:$0xff]  ;;  %v300_v19 = vld [vmem:[%s1742_s1 + $0x20] sm:$0xff]  ;;  %v297_v22 = vld [vmem:[%s1742_s1 + $0x8] sm:$0xff] }
  0x4c   : > { %1050 = vmatprep.subr.mxu0 %v308_v4  ;;  %1085 = vmatpush3.msra.mxu1 %v419_v8  ;;  %v299_v20 = vld [vmem:[%s1742_s1 + $0x18] sm:$0xff]  ;;  %v298_v21 = vld [vmem:[%s1742_s1 + $0x10] sm:$0xff]  ;;  %v296_v23 = vld [vmem:[%s1742_s1] sm:$0xff] }
  0x4d   : > { %1051 = vmatpush3.msra.mxu0 %v308_v4  ;;  %1086 = vmatprep.subr.mxu1 %v418_v10  ;;  %v293_v24 = vld [vmem:[%s1598_s16 + $0x8] sm:$0xff]  ;;  %v294_v25 = vld [vmem:[%s1598_s16 + $0x10] sm:$0xff]  ;;  %v295_v26 = vld [vmem:[%s1598_s16 + $0x18] sm:$0xff]  ;;  %s289_s16 = scalar_lea.vmem %s1747_s6, %s939_s18 }
  0x4e   : > { %1052 = vmatprep.subr.mxu0 %v307_v6  ;;  %1087 = vmatpush3.msra.mxu1 %v418_v10  ;;  %v414_v27 = vld [vmem:[#allocation5 + $0x48] sm:$0xff]  ;;  %v413_v28 = vld [vmem:[#allocation5 + $0x40] sm:$0xff]  ;;  %v412_v29 = vld [vmem:[#allocation5 + $0x38] sm:$0xff] }
  0x4f   : > { %1053 = vmatpush3.msra.mxu0 %v307_v6  ;;  %1088 = vmatprep.subr.mxu1 %v417_v12  ;;  %v411_v30 = vld [vmem:[#allocation5 + $0x30] sm:$0xff]  ;;  %v410_v31 = vld [vmem:[#allocation5 + $0x28] sm:$0xff]  ;;  %v409_v32 = vld [vmem:[#allocation5 + $0x20] sm:$0xff] }
  0x50   : > { %1054 = vmatprep.subr.mxu0 %v306_v9  ;;  %1089 = vmatpush3.msra.mxu1 %v417_v12  ;;  %v408_v33 = vld [vmem:[#allocation5 + $0x18] sm:$0xff]  ;;  %v407_v34 = vld [vmem:[#allocation5 + $0x10] sm:$0xff]  ;;  %v406_v35 = vld [vmem:[#allocation5 + $0x8] sm:$0xff]  ;;  %v423_v12 = vsub.s32 1, %v1660_v44 }
  0x51   : > { %1055 = vmatpush3.msra.mxu0 %v306_v9  ;;  %1090 = vmatprep.subr.mxu1 %v416_v14  ;;  %v405_v36 = vld [vmem:[#allocation5] sm:$0xff]  ;;  %v530_v37 = vld [vmem:[#allocation5 + $0xf8] sm:$0xff]  ;;  %v529_v38 = vld [vmem:[#allocation5 + $0xf0] sm:$0xff] }
  0x52   : > { %1056 = vmatprep.subr.mxu0 %v305_v11  ;;  %1091 = vmatpush3.msra.mxu1 %v416_v14  ;;  %v528_v39 = vld [vmem:[#allocation5 + $0xe8] sm:$0xff]  ;;  %v527_v40 = vld [vmem:[#allocation5 + $0xe0] sm:$0xff]  ;;  %v526_v41 = vld [vmem:[#allocation5 + $0xd8] sm:$0xff] }
  0x53   : > { %1057 = vmatpush3.msra.mxu0 %v305_v11  ;;  %1092 = vmatprep.subr.mxu1 %v415_v16  ;;  %v525_v42 = vld [vmem:[#allocation5 + $0xd0] sm:$0xff]  ;;  %v1666_v46 = vld [vmem:[%s1744_s3] sm:$0xf]  ;;  %v524_v60 = vld [vmem:[#allocation5 + $0xc8] sm:$0xff] }
  0x54   : > { %1058 = vmatprep.subr.mxu0 %v304_v13  ;;  %1093 = vmatpush3.msra.mxu1 %v415_v16  ;;  %v315_v47 = vrot.slane %v1666_v46, %v314_v45  ;;  %v523_v61 = vld [vmem:[#allocation5 + $0xc0] sm:$0xff]  ;;  %v522_v62 = vld [vmem:[#allocation5 + $0xb8] sm:$0xff]  ;;  %v521_v63 = vld [vmem:[#allocation5 + $0xb0] sm:$0xff] }
  0x55   : > { %1059 = vmatpush3.msra.mxu0 %v304_v13  ;;  %1094 = vmatprep.subr.mxu1 %v414_v27  ;;  %v520_v0 = vld [vmem:[#allocation5 + $0xa8] sm:$0xff]  ;;  %v519_v1 = vld [vmem:[#allocation5 + $0xa0] sm:$0xff]  ;;  %v518_v2 = vld [vmem:[#allocation5 + $0x98] sm:$0xff]  ;;  %v424_v13 = vrot.slane %v1666_v46, %v423_v12 }
  0x56   : > { %1060 = vmatprep.subr.mxu0 %v303_v15  ;;  %1095 = vmatpush3.msra.mxu1 %v414_v27  ;;  %v517_v3 = vld [vmem:[#allocation5 + $0x90] sm:$0xff]  ;;  %v516_v4 = vld [vmem:[#allocation5 + $0x88] sm:$0xff]  ;;  %v515_v5 = vld [vmem:[#allocation5 + $0x80] sm:$0xff] }
  0x57   : > { %1061 = vmatpush3.msra.mxu0 %v303_v15  ;;  %1096 = vmatprep.subr.mxu1 %v413_v28  ;;  %v640_v6 = vld [vmem:[#allocation5 + $0x178] sm:$0xff]  ;;  %v639_v7 = vld [vmem:[#allocation5 + $0x170] sm:$0xff]  ;;  %v638_v8 = vld [vmem:[#allocation5 + $0x168] sm:$0xff] }
  0x58   : > { %1062 = vmatprep.subr.mxu0 %v302_v17  ;;  %1097 = vmatpush3.msra.mxu1 %v413_v28  ;;  %v637_v9 = vld [vmem:[#allocation5 + $0x160] sm:$0xff]  ;;  %v636_v10 = vld [vmem:[#allocation5 + $0x158] sm:$0xff]  ;;  %v635_v11 = vld [vmem:[#allocation5 + $0x150] sm:$0xff] }
  0x59   : > { %1063 = vmatpush3.msra.mxu0 %v302_v17  ;;  %1098 = vmatprep.subr.mxu1 %v412_v29  ;;  %v633_v27 = vld [vmem:[#allocation5 + $0x140] sm:$0xff]  ;;  %v632_v28 = vld [vmem:[#allocation5 + $0x138] sm:$0xff] }
  0x5a   : > { %1064 = vmatprep.subr.mxu0 %v301_v18  ;;  %1099 = vmatpush3.msra.mxu1 %v412_v29  ;;  %v631_v29 = vld [vmem:[#allocation5 + $0x130] sm:$0xff] }
  0x5b   : > { %1065 = vmatpush3.msra.mxu0 %v301_v18  ;;  %1100 = vmatprep.subr.mxu1 %v411_v30 }
  0x5c   : > { %1066 = vmatprep.subr.mxu0 %v300_v19  ;;  %1101 = vmatpush3.msra.mxu1 %v411_v30  ;;  %v630_v30 = vld [vmem:[#allocation5 + $0x128] sm:$0xff] }
  0x5d   : > { %1067 = vmatpush3.msra.mxu0 %v300_v19  ;;  %1102 = vmatprep.subr.mxu1 %v410_v31 }
  0x5e   : > { %1068 = vmatprep.subr.mxu0 %v299_v20  ;;  %1103 = vmatpush3.msra.mxu1 %v410_v31  ;;  %v629_v31 = vld [vmem:[#allocation5 + $0x120] sm:$0xff] }
  0x5f   : > { %1069 = vmatpush3.msra.mxu0 %v299_v20  ;;  %1104 = vmatprep.subr.mxu1 %v409_v32 }
  0x60   : > { %1070 = vmatprep.subr.mxu0 %v298_v21  ;;  %1105 = vmatpush3.msra.mxu1 %v409_v32  ;;  %v628_v32 = vld [vmem:[#allocation5 + $0x118] sm:$0xff] }
  0x61   : > { %1071 = vmatpush3.msra.mxu0 %v298_v21  ;;  %1106 = vmatprep.subr.mxu1 %v408_v33 }
  0x62   : > { %1072 = vmatprep.subr.mxu0 %v297_v22  ;;  %1107 = vmatpush3.msra.mxu1 %v408_v33  ;;  %v627_v33 = vld [vmem:[#allocation5 + $0x110] sm:$0xff] }
  0x63   : > { %1073 = vmatpush3.msra.mxu0 %v297_v22  ;;  %1108 = vmatprep.subr.mxu1 %v407_v34 }
  0x64   : > { %1074 = vmatprep.subr.mxu0 %v296_v23  ;;  %1109 = vmatpush3.msra.mxu1 %v407_v34  ;;  %v626_v34 = vld [vmem:[#allocation5 + $0x108] sm:$0xff] }
  0x65   : > { %1075 = vmatpush3.msra.mxu0 %v296_v23  ;;  %1110 = vmatprep.subr.mxu1 %v406_v35 }
  0x66   : > { %1077 = vmatmul.mubr.f32.vlgmr.msra.gmra.mxu0 %v293_v24  ;;  %1111 = vmatpush3.msra.mxu1 %v406_v35  ;;  %v625_v35 = vld [vmem:[#allocation5 + $0x100] sm:$0xff] }
  0x67   : > { %1079 = vmatprep.mubr.f32.mxu0 %v294_v25  ;;  %1112 = vmatprep.subr.mxu1 %v405_v36 }
  0x68   : > { %1113 = vmatpush3.msra.mxu1 %v405_v36  ;;  %1120 = vmatprep.subr.mxu0 %v530_v37  ;;  %v749_v36 = vld [vmem:[%s1745_s4 + $0x78] sm:$0xff] }
  0x69   : > { %1121 = vmatpush3.msra.mxu0 %v530_v37  ;;  %1158 = vmatprep.subr.mxu1 %v640_v6  ;;  %v748_v37 = vld [vmem:[%s1745_s4 + $0x70] sm:$0xff] }
  0x6a   : > { %1080 = vmatmul.mubr.f32.gmra.mxu0 %v295_v26  ;;  %1122 = vmatprep.subr.mxu0 %v529_v38  ;;  %v634_v26 = vld [vmem:[#allocation5 + $0x148] sm:$0xff] }
  0x6b   : > { %1123 = vmatpush3.msra.mxu0 %v529_v38  ;;  %v747_v38 = vld [vmem:[%s1745_s4 + $0x68] sm:$0xff] }
  0x6c   : > { %1124 = vmatprep.subr.mxu0 %v528_v39 }
  0x6d   : > { %1125 = vmatpush3.msra.mxu0 %v528_v39  ;;  %v746_v39 = vld [vmem:[%s1745_s4 + $0x60] sm:$0xff] }
  0x6e   : > { %1126 = vmatprep.subr.mxu0 %v527_v40 }
  0x6f   : > { %1127 = vmatpush3.msra.mxu0 %v527_v40  ;;  %v745_v40 = vld [vmem:[%s1745_s4 + $0x58] sm:$0xff] }
  0x70   : > { %1128 = vmatprep.subr.mxu0 %v526_v41 }
  0x71   : > { %1129 = vmatpush3.msra.mxu0 %v526_v41  ;;  %v744_v41 = vld [vmem:[%s1745_s4 + $0x50] sm:$0xff] }
  0x72   : > { %1130 = vmatprep.subr.mxu0 %v525_v42 }
  0x73   : > { %1131 = vmatpush3.msra.mxu0 %v525_v42  ;;  %v533_v42 = vsub.s32 2, %v1660_v44 }
  0x74   : > { %1132 = vmatprep.subr.mxu0 %v524_v60 }
  0x75   : > { %1133 = vmatpush3.msra.mxu0 %v524_v60  ;;  %v534_v43 = vrot.slane %v1666_v46, %v533_v42  ;;  %v741_v60 = vld [vmem:[%s1745_s4 + $0x38] sm:$0xff] }
  0x76   : > { %1134 = vmatprep.subr.mxu0 %v523_v61 }
  0x77   : > { %1135 = vmatpush3.msra.mxu0 %v523_v61  ;;  %v740_v61 = vld [vmem:[%s1745_s4 + $0x30] sm:$0xff] }
  0x78   : > { %1136 = vmatprep.subr.mxu0 %v522_v62 }
  0x79   : > { %1137 = vmatpush3.msra.mxu0 %v522_v62  ;;  %v739_v62 = vld [vmem:[%s1745_s4 + $0x28] sm:$0xff] }
  0x7a   : > { %1138 = vmatprep.subr.mxu0 %v521_v63 }
  0x7b   : > { %1139 = vmatpush3.msra.mxu0 %v521_v63  ;;  %v738_v63 = vld [vmem:[%s1745_s4 + $0x20] sm:$0xff] }
  0x7c   : > { %1140 = vmatprep.subr.mxu0 %v520_v0 }
  0x7d   : > { %1141 = vmatpush3.msra.mxu0 %v520_v0  ;;  %v737_v0 = vld [vmem:[%s1745_s4 + $0x18] sm:$0xff] }
  0x7e   : > { %1142 = vmatprep.subr.mxu0 %v519_v1 }
  0x7f   : > { %1143 = vmatpush3.msra.mxu0 %v519_v1  ;;  %v736_v1 = vld [vmem:[%s1745_s4 + $0x10] sm:$0xff] }
  0x80   : > { %1144 = vmatprep.subr.mxu0 %v518_v2 }
  0x81   : > { %1145 = vmatpush3.msra.mxu0 %v518_v2  ;;  %v735_v2 = vld [vmem:[%s1745_s4 + $0x8] sm:$0xff] }
  0x82   : > { %1146 = vmatprep.subr.mxu0 %v517_v3 }
  0x83   : > { %1147 = vmatpush3.msra.mxu0 %v517_v3  ;;  %v734_v3 = vld [vmem:[%s1745_s4] sm:$0xff] }
  0x84   : > { %1148 = vmatprep.subr.mxu0 %v516_v4 }
  0x85   : > { %1149 = vmatpush3.msra.mxu0 %v516_v4  ;;  %v940_v4 = vld [vmem:[#allocation2] ss:$0 sm:$0xff] }
  0x86   : > { %1150 = vmatprep.subr.mxu0 %v515_v5 }
  0x87   : > { %1151 = vmatpush3.msra.mxu0 %v515_v5  ;;  %v1450_v5 = vmov 0  }
  0x88   : > { %1196 = vmatprep.subr.mxu0 %v749_v36  ;;  %1319 = vset.pattern.permute.xlu0 %v1450_v5 }
  0x89   : > { %757 = vperm.xlu0 %1319, %v940_v4  }
 0x126   : > { %v1078_v48 = vpop.f32.mrf.mxu0 }
 0x127   : > { %v388_v49 = vadd.f32 %v1078_v48, %v315_v47 }
 0x128   : > { %v382_v50 = vpop.f32.mrf.mxu0 }
 0x129   : > { %v383_v51 = vadd.f32 %v382_v50, %v315_v47 }
 0x12a   : > { %v1081_v52 = vpop.f32.mrf.mxu0 }
 0x12b   : > { %1320 = vtanh.f32 %v383_v51  ;;  %v398_v53 = vadd.f32 %v1081_v52, %v315_v47 }
 0x12c   : > { %1322 = vtanh.f32 %v388_v49  ;;  %v392_v54 = vpop.f32.mrf.mxu0 }
 0x12d   : > { %v393_v55 = vadd.f32 %v392_v54, %v315_v47 }
 0x12f   : > { %1324 = vtanh.f32 %v393_v55 }
 0x130   : > { %1326 = vtanh.f32 %v398_v53 }
 0x138   : > { %v1321_v56 = vpop.eup %1320 }
 0x139   : > { %v1323_v57 = vpop.eup %1322  ;;  %1114 = vmatprep.mubr.f32.mxu1 %v1321_v56 }
 0x13a   : > { %1115 = vmatmul.mubr.f32.vlgmr.msra.gmra.mxu1 %v1323_v57 }
 0x13b   : > { %1159 = vmatpush3.msra.mxu1 %v640_v6  ;;  %v643_v6 = vsub.s32 3, %v1660_v44 }
 0x13c   : > { %v1325_v58 = vpop.eup %1324  ;;  %1160 = vmatprep.subr.mxu1 %v639_v7 }
 0x13d   : > { %v1327_v59 = vpop.eup %1326  ;;  %1117 = vmatprep.mubr.f32.mxu1 %v1325_v58  ;;  %1161 = vmatpush3.msra.mxu1 %v639_v7  ;;  %v743_v58 = vld [vmem:[%s1745_s4 + $0x48] sm:$0xff]  ;;  %v644_v7 = vrot.slane %v1666_v46, %v643_v6 }
 0x13e   : > { %1118 = vmatmul.mubr.f32.gmra.mxu1 %v1327_v59  ;;  %1162 = vmatprep.subr.mxu1 %v638_v8  ;;  %v742_v59 = vld [vmem:[%s1745_s4 + $0x40] sm:$0xff] }
 0x13f   : > { %1163 = vmatpush3.msra.mxu1 %v638_v8 }
 0x140   : > { %1164 = vmatprep.subr.mxu1 %v637_v9 }
 0x141   : > { %1165 = vmatpush3.msra.mxu1 %v637_v9 }
 0x142   : > { %1166 = vmatprep.subr.mxu1 %v636_v10 }
 0x143   : > { %1167 = vmatpush3.msra.mxu1 %v636_v10 }
 0x144   : > { %1168 = vmatprep.subr.mxu1 %v635_v11 }
 0x145   : > { %1169 = vmatpush3.msra.mxu1 %v635_v11 }
 0x146   : > { %1170 = vmatprep.subr.mxu1 %v634_v26 }
 0x147   : > { %1171 = vmatpush3.msra.mxu1 %v634_v26 }
 0x148   : > { %1172 = vmatprep.subr.mxu1 %v633_v27 }
 0x149   : > { %1173 = vmatpush3.msra.mxu1 %v633_v27 }
 0x14a   : > { %1174 = vmatprep.subr.mxu1 %v632_v28 }
 0x14b   : > { %1175 = vmatpush3.msra.mxu1 %v632_v28 }
 0x14c   : > { %1176 = vmatprep.subr.mxu1 %v631_v29 }
 0x14d   : > { %1177 = vmatpush3.msra.mxu1 %v631_v29 }
 0x14e   : > { %1178 = vmatprep.subr.mxu1 %v630_v30 }
 0x14f   : > { %1179 = vmatpush3.msra.mxu1 %v630_v30 }
 0x150   : > { %1180 = vmatprep.subr.mxu1 %v629_v31 }
 0x151   : > { %1181 = vmatpush3.msra.mxu1 %v629_v31 }
 0x152   : > { %1182 = vmatprep.subr.mxu1 %v628_v32 }
 0x153   : > { %1183 = vmatpush3.msra.mxu1 %v628_v32 }
 0x154   : > { %1184 = vmatprep.subr.mxu1 %v627_v33 }
 0x155   : > { %1185 = vmatpush3.msra.mxu1 %v627_v33 }
 0x156   : > { %1186 = vmatprep.subr.mxu1 %v626_v34 }
 0x157   : > { %1187 = vmatpush3.msra.mxu1 %v626_v34 }
 0x158   : > { %1188 = vmatprep.subr.mxu1 %v625_v35 }
 0x159   : > { %1189 = vmatpush3.msra.mxu1 %v625_v35 }
 0x15a   : > { %1234 = vmatprep.subr.mxu1 %v749_v36 }
 0x1fa   : > { %v1116_v14 = vpop.f32.mrf.mxu1 }
 0x1fb   : > { %v497_v15 = vadd.f32 %v1116_v14, %v424_v13 }
 0x1fc   : > { %v491_v16 = vpop.f32.mrf.mxu1 }
 0x1fd   : > { %v492_v17 = vadd.f32 %v491_v16, %v424_v13 }
 0x1fe   : > { %v1119_v18 = vpop.f32.mrf.mxu1 }
 0x1ff   : > { %1328 = vtanh.f32 %v492_v17  ;;  %v507_v19 = vadd.f32 %v1119_v18, %v424_v13 }
 0x200   : > { %1330 = vtanh.f32 %v497_v15  ;;  %v501_v20 = vpop.f32.mrf.mxu1 }
 0x201   : > { %v502_v21 = vadd.f32 %v501_v20, %v424_v13 }
 0x203   : > { %1332 = vtanh.f32 %v502_v21 }
 0x204   : > { %1334 = vtanh.f32 %v507_v19  ;;  %v758_v19 = vpop.permute.xlu0 %757 }
 0x20c   : > { %v1329_v22 = vpop.eup %1328 }
 0x20d   : > { %v1331_v23 = vpop.eup %1330  ;;  %1152 = vmatprep.mubr.f32.mxu0 %v1329_v22 }
 0x20e   : > { %1153 = vmatmul.mubr.f32.vlgmr.msra.gmra.mxu0 %v1331_v23 }
 0x20f   : > { %1197 = vmatpush3.msra.mxu0 %v749_v36 }
 0x210   : > { %v1333_v24 = vpop.eup %1332  ;;  %1198 = vmatprep.subr.mxu0 %v748_v37 }
 0x211   : > { %v1335_v25 = vpop.eup %1334  ;;  %1155 = vmatprep.mubr.f32.mxu0 %v1333_v24  ;;  %1199 = vmatpush3.msra.mxu0 %v748_v37 }
 0x212   : > { %1156 = vmatmul.mubr.f32.gmra.mxu0 %v1335_v25  ;;  %1200 = vmatprep.subr.mxu0 %v747_v38 }
 0x213   : > { %1201 = vmatpush3.msra.mxu0 %v747_v38 }
 0x214   : > { %1202 = vmatprep.subr.mxu0 %v746_v39 }
 0x215   : > { %1203 = vmatpush3.msra.mxu0 %v746_v39 }
 0x216   : > { %1204 = vmatprep.subr.mxu0 %v745_v40 }
 0x217   : > { %1205 = vmatpush3.msra.mxu0 %v745_v40 }
 0x218   : > { %1206 = vmatprep.subr.mxu0 %v744_v41 }
 0x219   : > { %1207 = vmatpush3.msra.mxu0 %v744_v41 }
 0x21a   : > { %1208 = vmatprep.subr.mxu0 %v743_v58 }
 0x21b   : > { %1209 = vmatpush3.msra.mxu0 %v743_v58 }
 0x21c   : > { %1210 = vmatprep.subr.mxu0 %v742_v59 }
 0x21d   : > { %1211 = vmatpush3.msra.mxu0 %v742_v59 }
 0x21e   : > { %1212 = vmatprep.subr.mxu0 %v741_v60 }
 0x21f   : > { %1213 = vmatpush3.msra.mxu0 %v741_v60 }
 0x220   : > { %1214 = vmatprep.subr.mxu0 %v740_v61 }
 0x221   : > { %1215 = vmatpush3.msra.mxu0 %v740_v61 }
 0x222   : > { %1216 = vmatprep.subr.mxu0 %v739_v62 }
 0x223   : > { %1217 = vmatpush3.msra.mxu0 %v739_v62 }
 0x224   : > { %1218 = vmatprep.subr.mxu0 %v738_v63 }
 0x225   : > { %1219 = vmatpush3.msra.mxu0 %v738_v63 }
 0x226   : > { %1220 = vmatprep.subr.mxu0 %v737_v0 }
 0x227   : > { %1221 = vmatpush3.msra.mxu0 %v737_v0 }
 0x228   : > { %1222 = vmatprep.subr.mxu0 %v736_v1 }
 0x229   : > { %1223 = vmatpush3.msra.mxu0 %v736_v1 }
 0x22a   : > { %1224 = vmatprep.subr.mxu0 %v735_v2 }
 0x22b   : > { %1225 = vmatpush3.msra.mxu0 %v735_v2 }
 0x22c   : > { %1226 = vmatprep.subr.mxu0 %v734_v3 }
 0x22d   : > { %1227 = vmatpush3.msra.mxu0 %v734_v3 }
 0x2ce   : > { %v1154_v45 = vpop.f32.mrf.mxu0 }
 0x2cf   : > { %v607_v47 = vadd.f32 %v1154_v45, %v534_v43 }
 0x2d0   : > { %v601_v48 = vpop.f32.mrf.mxu0 }
 0x2d1   : > { %v602_v49 = vadd.f32 %v601_v48, %v534_v43 }
 0x2d2   : > { %v1157_v50 = vpop.f32.mrf.mxu0 }
 0x2d3   : > { %1336 = vtanh.f32 %v602_v49  ;;  %v617_v51 = vadd.f32 %v1157_v50, %v534_v43 }
 0x2d4   : > { %1338 = vtanh.f32 %v607_v47  ;;  %v611_v52 = vpop.f32.mrf.mxu0 }
 0x2d5   : > { %v612_v53 = vadd.f32 %v611_v52, %v534_v43 }
 0x2d7   : > { %1340 = vtanh.f32 %v612_v53 }
 0x2d8   : > { %1342 = vtanh.f32 %v617_v51 }
 0x2e0   : > { %v1337_v54 = vpop.eup %1336 }
 0x2e1   : > { %v1339_v55 = vpop.eup %1338  ;;  %1190 = vmatprep.mubr.f32.mxu1 %v1337_v54 }
 0x2e2   : > { %1191 = vmatmul.mubr.f32.vlgmr.msra.gmra.mxu1 %v1339_v55 }
 0x2e3   : > { %1250 = vmatpush3.msra.mxu1 %v749_v36 }
 0x2e4   : > { %v1341_v56 = vpop.eup %1340  ;;  %1235 = vmatprep.subr.mxu1 %v748_v37 }
 0x2e5   : > { %v1343_v57 = vpop.eup %1342  ;;  %1193 = vmatprep.mubr.f32.mxu1 %v1341_v56  ;;  %1251 = vmatpush3.msra.mxu1 %v748_v37 }
 0x2e6   : > { %1194 = vmatmul.mubr.f32.gmra.mxu1 %v1343_v57  ;;  %1236 = vmatprep.subr.mxu1 %v747_v38 }
 0x2e7   : > { %1252 = vmatpush3.msra.mxu1 %v747_v38 }
 0x2e8   : > { %1237 = vmatprep.subr.mxu1 %v746_v39 }
 0x2e9   : > { %1253 = vmatpush3.msra.mxu1 %v746_v39 }
 0x2ea   : > { %1238 = vmatprep.subr.mxu1 %v745_v40 }
 0x2eb   : > { %1254 = vmatpush3.msra.mxu1 %v745_v40 }
 0x2ec   : > { %1239 = vmatprep.subr.mxu1 %v744_v41 }
 0x2ed   : > { %1255 = vmatpush3.msra.mxu1 %v744_v41 }
 0x2ee   : > { %1240 = vmatprep.subr.mxu1 %v743_v58 }
 0x2ef   : > { %1256 = vmatpush3.msra.mxu1 %v743_v58 }
 0x2f0   : > { %1241 = vmatprep.subr.mxu1 %v742_v59 }
 0x2f1   : > { %1257 = vmatpush3.msra.mxu1 %v742_v59 }
 0x2f2   : > { %1242 = vmatprep.subr.mxu1 %v741_v60 }
 0x2f3   : > { %1258 = vmatpush3.msra.mxu1 %v741_v60 }
 0x2f4   : > { %1243 = vmatprep.subr.mxu1 %v740_v61 }
 0x2f5   : > { %1259 = vmatpush3.msra.mxu1 %v740_v61 }
 0x2f6   : > { %1244 = vmatprep.subr.mxu1 %v739_v62 }
 0x2f7   : > { %1260 = vmatpush3.msra.mxu1 %v739_v62 }
 0x2f8   : > { %1245 = vmatprep.subr.mxu1 %v738_v63 }
 0x2f9   : > { %1261 = vmatpush3.msra.mxu1 %v738_v63 }
 0x2fa   : > { %1246 = vmatprep.subr.mxu1 %v737_v0 }
 0x2fb   : > { %1262 = vmatpush3.msra.mxu1 %v737_v0 }
 0x2fc   : > { %1247 = vmatprep.subr.mxu1 %v736_v1 }
 0x2fd   : > { %1263 = vmatpush3.msra.mxu1 %v736_v1 }
 0x2fe   : > { %1248 = vmatprep.subr.mxu1 %v735_v2 }
 0x2ff   : > { %1264 = vmatpush3.msra.mxu1 %v735_v2 }
 0x300   : > { %1249 = vmatprep.subr.mxu1 %v734_v3 }
 0x301   : > { %1265 = vmatpush3.msra.mxu1 %v734_v3 }
 0x3a2   : > { %v1192_v8 = vpop.f32.mrf.mxu1 }
 0x3a3   : > { %v717_v9 = vadd.f32 %v1192_v8, %v644_v7 }
 0x3a4   : > { %v711_v10 = vpop.f32.mrf.mxu1 }
 0x3a5   : > { %v712_v11 = vadd.f32 %v711_v10, %v644_v7 }
 0x3a6   : > { %v1195_v12 = vpop.f32.mrf.mxu1 }
 0x3a7   : > { %1344 = vtanh.f32 %v712_v11  ;;  %v727_v13 = vadd.f32 %v1195_v12, %v644_v7 }
 0x3a8   : > { %1346 = vtanh.f32 %v717_v9  ;;  %v721_v14 = vpop.f32.mrf.mxu1 }
 0x3a9   : > { %v722_v15 = vadd.f32 %v721_v14, %v644_v7 }
 0x3ab   : > { %1348 = vtanh.f32 %v722_v15 }
 0x3ac   : > { %1350 = vtanh.f32 %v727_v13 }
 0x3b4   : > { %v1345_v16 = vpop.eup %1344 }
 0x3b5   : > { %v1347_v17 = vpop.eup %1346  ;;  %1228 = vmatprep.mubr.f32.mxu0 %v1345_v16 }
 0x3b6   : > { %1229 = vmatmul.mubr.f32.vlgmr.msra.gmra.mxu0 %v1347_v17 }
 0x3b8   : > { %v1349_v44 = vpop.eup %1348 }
 0x3b9   : > { %v1351_v18 = vpop.eup %1350  ;;  %1231 = vmatprep.mubr.f32.mxu1 %v1349_v44 }
 0x3ba   : > { %1232 = vmatmul.mubr.f32.vlgmr.msra.gmra.mxu1 %v1351_v18 }
 0x476   : > { %v1230_v46 = vpop.f32.mrf.mxu0 }
 0x477   : > { %v832_v22 = vadd.f32 %v1230_v46, %v758_v19 }
 0x478   : > { %v826_v20 = vpop.f32.mrf.mxu0 }
 0x479   : > { %v827_v21 = vadd.f32 %v826_v20, %v758_v19  ;;  %847 = vst.msk [vmem:[%s289_s16 + $0x8] sm:$0xff] %vm845_vm0, %v832_v22 }
 0x47a   : > { %v1233_v23 = vpop.f32.mrf.mxu1 }
 0x47b   : > { %846 = vst.msk [vmem:[%s289_s16] sm:$0xff] %vm845_vm0, %v827_v21  ;;  %v842_v26 = vadd.f32 %v1233_v23, %v758_v19 }
 0x47c   : > { %v836_v24 = vpop.f32.mrf.mxu1 }
 0x47d   : > { %v837_v25 = vadd.f32 %v836_v24, %v758_v19  ;;  %849 = vst.msk [vmem:[%s289_s16 + $0x18] sm:$0xff] %vm845_vm0, %v842_v26 }
 0x47f   : > { %848 = vst.msk [vmem:[%s289_s16 + $0x10] sm:$0xff] %vm845_vm0, %v837_v25 }
 0x480 PF: > { %p19_p7 = scmp.ge.s32.totalorder %s1536_s9, 4   ;;  %s1760_s23 = smov %s1436_s24 }
 0x481   : > { %s1761_s24 = smov %s1440_s25  ;;  %s1762_s25 = smov %s1556_s17 }
 0x482   : > { %s1763_s26 = smov %s1536_s9  ;;  %21 = sbr.rel (!%p19_p7) target bundleno = 7 (0x7), region = 90 }
 0x487   :  { %872 = vsyncpa [#allocation4], 1 }
 0x488   :  { %874 = vsyncpa [#allocation4 + $0x1], 1 }
 0x489   :  { %875 = vsyncpa [#allocation6], 1 }

</bundles_post_ra>
